<compile_context>
chip_gen: v7x
topology: tpu7x:2x2x1
jax: 0.10.0
libtpu: 0.0.40
codegen_flags: <defaults>
</compile_context>

<pallas_src>
import functools

import jax
import jax.numpy as jnp
from jax import lax
from jax.experimental import pallas as pl
from jax.experimental.pallas import tpu as pltpu


def _round_up(v: int, m: int) -> int:
    return ((v + m - 1) // m) * m


def _proto_loss_kernel(x_ref, y_ref, out_ref, acc_ref, *,
                       n_rows: int, n_classes: int, tile_n: int):
    pid = pl.program_id(0)

    @pl.when(pid == 0)
    def _init():
        acc_ref[0] = jnp.float32(0.0)   # sum_i ( logsumexp(-x_i) + x[i, y_i] )
        acc_ref[1] = jnp.float32(0.0)   # sum_{i,j} x[i, j]

    x = x_ref[...].astype(jnp.float32)      # (TN, C) — upcast in-vreg only
    y = y_ref[...]                          # (TN, 1) int32

    # Numerically-stable logsumexp(-x) per row.
    neg = -x
    m = jnp.max(neg, axis=-1, keepdims=True)                                # (TN, 1)
    lse = m + jnp.log(jnp.sum(jnp.exp(neg - m), axis=-1, keepdims=True))    # (TN, 1)

    # x[i, y_i] via a select folded into the same reduction pass (no dyn gather).
    col = lax.broadcasted_iota(jnp.int32, x.shape, 1)                       # (TN, C)
    x_at_y = jnp.sum(jnp.where(col == y, x, 0.0), axis=-1, keepdims=True)   # (TN, 1)

    ce_rows = lse + x_at_y                                                  # (TN, 1)

    if n_rows % tile_n != 0:
        # Mask zero-padded rows of the last tile out of BOTH terms.
        # (Static Python branch: costs nothing when N is already tile-aligned.)
        row = pid * tile_n + lax.broadcasted_iota(jnp.int32, (tile_n, 1), 0)
        valid = row < n_rows                                                # (TN, 1)
        ce_rows = jnp.where(valid, ce_rows, 0.0)
        x_tile_sum = jnp.sum(jnp.where(valid, x, 0.0))
    else:
        x_tile_sum = jnp.sum(x)

    # Raw-sum accumulation; divide once at finalize (one reduce per quantity/tile).
    acc_ref[0] += jnp.sum(ce_rows)
    acc_ref[1] += x_tile_sum

    @pl.when(pid == pl.num_programs(0) - 1)
    def _finalize():
        inv_n = 1.0 / float(n_rows)
        inv_nc = 1.0 / (float(n_rows) * float(n_classes))
        out_ref[0] = acc_ref[0] * inv_n + acc_ref[1] * inv_nc


def prototypical_network_loss(x: jax.Array, y: jax.Array, *,
                              tile_n: int = 512) -> jax.Array:
    """Pallas-TPU equivalent of `F.cross_entropy(-x, y) + x.mean()`.

    x: (N, C) float32/bfloat16 distances, y: (N,) integer class ids.
    Returns a scalar float32 loss.
    """
    n, c = x.shape

    # Row tile: multiple of 8 sublanes; 2 double-buffered (tile_n, C) tiles must stay
    # well inside scoped VMEM (16/32/32 MiB on v5e/v6e/v7x; v7x has only 64 MiB
    # physical, so keep tiles modest — 512 rows x C f32 is comfortable everywhere).
    tile_n = max(8, min(int(tile_n), _round_up(n, 8)))
    tile_n = _round_up(tile_n, 8)

    n_pad = _round_up(n, tile_n)
    if n_pad != n:
        x = jnp.pad(x, ((0, n_pad - n), (0, 0)))
        y = jnp.pad(y, ((0, n_pad - n),))
    y2d = y.astype(jnp.int32).reshape(n_pad, 1)

    grid = (n_pad // tile_n,)
    kernel = functools.partial(
        _proto_loss_kernel, n_rows=n, n_classes=c, tile_n=tile_n)

    # TODO(synk): highest-value change is fusing this as an epilogue of the kernel
    # that produces x (the query->prototype distance matmul), eliminating the HBM
    # round trip of x; that producer is not part of this module, so it stays standalone.
    out = pl.pallas_call(
        kernel,
        out_shape=jax.ShapeDtypeStruct((1,), jnp.float32),
        grid=grid,
        in_specs=[
            pl.BlockSpec((tile_n, c), lambda i: (i, 0)),
            pl.BlockSpec((tile_n, 1), lambda i: (i, 0)),
        ],
        out_specs=pl.BlockSpec(memory_space=pltpu.MemorySpace.SMEM),
        scratch_shapes=[pltpu.SMEM((2,), jnp.float32)],
        compiler_params=pltpu.CompilerParams(
            dimension_semantics=("arbitrary",),   # reduction / accumulator axis
        ),
    )(x, y2d)
    return out[0]


if __name__ == "__main__":
    key = jax.random.PRNGKey(0)
    kx, ky = jax.random.split(key)

    N, C = 20, 32   # N query samples, C classes (N deliberately not tile-aligned)
    x = jax.random.normal(kx, (N, C), dtype=jnp.float32)
    y = jax.random.randint(ky, (N,), 0, C, dtype=jnp.int32)

    # Small tile to exercise the gridded accumulator + remainder-row masking.
    loss = prototypical_network_loss(x, y, tile_n=8)
    jax.block_until_ready(loss)

    # Pure-JAX reference (same math as F.cross_entropy(-x, y) + x.mean()).
    logits = -x
    ref_ce = jnp.mean(
        jax.scipy.special.logsumexp(logits, axis=-1)
        - logits[jnp.arange(N), y]
    )
    ref = ref_ce + jnp.mean(x)
    assert jnp.allclose(loss, ref, atol=1e-5, rtol=1e-5), (loss, ref)

    print("KERNEL_OK")
</pallas_src>

<mosaic_0001>
module attributes {stable_mosaic.version = 11 : i64} {
  func.func @_proto_loss_kernel(%arg0: i32, %arg1: memref<8x32xf32, #tpu.memory_space<vmem>>, %arg2: memref<8x1xi32, #tpu.memory_space<vmem>>, %arg3: memref<1xf32, #tpu.memory_space<smem>>, %arg4: memref<2xf32, #tpu.memory_space<smem>>) attributes {dimension_semantics = [#tpu.dimension_semantics<arbitrary>], iteration_bounds = array<i64: 3>, scalar_prefetch = 0 : i64, scratch_operands = 1 : i64, tpu.core_type = #tpu.core_type<tc>, window_params = [{transform_indices = @transform_0, window_bounds = array<i64: 8, 32>}, {transform_indices = @transform_1, window_bounds = array<i64: 8, 1>}, {transform_indices = @transform_2, window_bounds = array<i64: 1>}]} {
    %c0_i32 = arith.constant 0 : i32
    %0 = arith.cmpi eq, %arg0, %c0_i32 : i32
    %1 = arith.extui %0 : i1 to i32
    %c0_i32_0 = arith.constant 0 : i32
    %2 = arith.cmpi ne, %1, %c0_i32_0 : i32
    scf.if %2 {
      %cst_16 = arith.constant 0.000000e+00 : f32
      %c0_17 = arith.constant 0 : index
      %53 = memref.load %arg4[%c0_17] : memref<2xf32, #tpu.memory_space<smem>>
      memref.store %cst_16, %arg4[%c0_17] : memref<2xf32, #tpu.memory_space<smem>>
      %cst_18 = arith.constant 0.000000e+00 : f32
      %c1_19 = arith.constant 1 : index
      %54 = memref.load %arg4[%c1_19] : memref<2xf32, #tpu.memory_space<smem>>
      memref.store %cst_18, %arg4[%c1_19] : memref<2xf32, #tpu.memory_space<smem>>
    } else {
    }
    %c0 = arith.constant 0 : index
    %c0_1 = arith.constant 0 : index
    %3 = vector.load %arg1[%c0, %c0_1] : memref<8x32xf32, #tpu.memory_space<vmem>>, vector<8x32xf32>
    %c0_2 = arith.constant 0 : index
    %c0_3 = arith.constant 0 : index
    %4 = vector.load %arg2[%c0_2, %c0_3] : memref<8x1xi32, #tpu.memory_space<vmem>>, vector<8x1xi32>
    %cst = arith.constant 0.000000e+00 : f32
    %5 = vector.broadcast %cst : f32 to vector<8x32xf32>
    %6 = arith.subf %5, %3 : vector<8x32xf32>
    %cst_4 = arith.constant dense<0xFF800000> : vector<8xf32>
    %7 = vector.multi_reduction <maximumf>, %6, %cst_4 [1] : vector<8x32xf32> to vector<8xf32>
    %8 = vector.shape_cast %7 : vector<8xf32> to vector<8x1xf32>
    %9 = vector.broadcast %8 : vector<8x1xf32> to vector<8x32xf32>
    %10 = arith.subf %6, %9 : vector<8x32xf32>
    %11 = math.exp %10 : vector<8x32xf32>
    %cst_5 = arith.constant dense<0.000000e+00> : vector<8xf32>
    %12 = vector.multi_reduction <add>, %11, %cst_5 [1] : vector<8x32xf32> to vector<8xf32>
    %13 = vector.shape_cast %12 : vector<8xf32> to vector<8x1xf32>
    %14 = math.log %13 : vector<8x1xf32>
    %15 = arith.addf %8, %14 : vector<8x1xf32>
    %16 = tpu.iota {dimensions = array<i32: 1>} : vector<8x32xi32>
    %17 = vector.broadcast %4 : vector<8x1xi32> to vector<8x32xi32>
    %18 = arith.cmpi eq, %16, %17 : vector<8x32xi32>
    %cst_6 = arith.constant 0.000000e+00 : f32
    %19 = vector.broadcast %cst_6 : f32 to vector<8x32xf32>
    %20 = arith.select %18, %3, %19 : vector<8x32xi1>, vector<8x32xf32>
    %cst_7 = arith.constant dense<0.000000e+00> : vector<8xf32>
    %21 = vector.multi_reduction <add>, %20, %cst_7 [1] : vector<8x32xf32> to vector<8xf32>
    %22 = vector.shape_cast %21 : vector<8xf32> to vector<8x1xf32>
    %23 = arith.addf %15, %22 : vector<8x1xf32>
    %c8_i32 = arith.constant 8 : i32
    %24 = arith.muli %arg0, %c8_i32 : i32
    %25 = tpu.iota {dimensions = array<i32: 0>} : vector<8x1xi32>
    %26 = vector.broadcast %24 : i32 to vector<8x1xi32>
    %27 = arith.addi %26, %25 : vector<8x1xi32>
    %c20_i32 = arith.constant 20 : i32
    %28 = vector.broadcast %c20_i32 : i32 to vector<8x1xi32>
    %29 = arith.cmpi slt, %27, %28 : vector<8x1xi32>
    %cst_8 = arith.constant 0.000000e+00 : f32
    %30 = vector.broadcast %cst_8 : f32 to vector<8x1xf32>
    %31 = arith.select %29, %23, %30 : vector<8x1xi1>, vector<8x1xf32>
    %cst_9 = arith.constant 0.000000e+00 : f32
    %32 = vector.shape_cast %29 : vector<8x1xi1> to vector<8x1xi1>
    %33 = vector.broadcast %32 : vector<8x1xi1> to vector<8x32xi1>
    %34 = vector.broadcast %cst_9 : f32 to vector<8x32xf32>
    %35 = arith.select %33, %3, %34 : vector<8x32xi1>, vector<8x32xf32>
    %36 = vector.shape_cast %35 : vector<8x32xf32> to vector<1x8x32xf32>
    %cst_10 = arith.constant dense<0.000000e+00> : vector<1xf32>
    %37 = vector.multi_reduction <add>, %36, %cst_10 [1, 2] : vector<1x8x32xf32> to vector<1xf32>
    %38 = vector.shape_cast %37 : vector<1xf32> to vector<1x1x1xf32>
    %39 = vector.extract %38[0, 0, 0] : f32 from vector<1x1x1xf32>
    %c0_11 = arith.constant 0 : index
    %40 = memref.load %arg4[%c0_11] : memref<2xf32, #tpu.memory_space<smem>>
    %41 = vector.shape_cast %31 : vector<8x1xf32> to vector<1x8x1xf32>
    %cst_12 = arith.constant dense<0.000000e+00> : vector<1xf32>
    %42 = vector.multi_reduction <add>, %41, %cst_12 [1, 2] : vector<1x8x1xf32> to vector<1xf32>
    %43 = vector.shape_cast %42 : vector<1xf32> to vector<1x1x1xf32>
    %44 = vector.extract %43[0, 0, 0] : f32 from vector<1x1x1xf32>
    %45 = arith.addf %40, %44 : f32
    %c0_13 = arith.constant 0 : index
    %46 = memref.load %arg4[%c0_13] : memref<2xf32, #tpu.memory_space<smem>>
    memref.store %45, %arg4[%c0_13] : memref<2xf32, #tpu.memory_space<smem>>
    %c1 = arith.constant 1 : index
    %47 = memref.load %arg4[%c1] : memref<2xf32, #tpu.memory_space<smem>>
    %48 = arith.addf %47, %39 : f32
    %c1_14 = arith.constant 1 : index
    %49 = memref.load %arg4[%c1_14] : memref<2xf32, #tpu.memory_space<smem>>
    memref.store %48, %arg4[%c1_14] : memref<2xf32, #tpu.memory_space<smem>>
    %c2_i32 = arith.constant 2 : i32
    %50 = arith.cmpi eq, %arg0, %c2_i32 : i32
    %51 = arith.extui %50 : i1 to i32
    %c0_i32_15 = arith.constant 0 : i32
    %52 = arith.cmpi ne, %51, %c0_i32_15 : i32
    scf.if %52 {
      %c0_16 = arith.constant 0 : index
      %53 = memref.load %arg4[%c0_16] : memref<2xf32, #tpu.memory_space<smem>>
      %cst_17 = arith.constant 5.000000e-02 : f32
      %54 = arith.mulf %53, %cst_17 : f32
      %c1_18 = arith.constant 1 : index
      %55 = memref.load %arg4[%c1_18] : memref<2xf32, #tpu.memory_space<smem>>
      %cst_19 = arith.constant 1.562500e-03 : f32
      %56 = arith.mulf %55, %cst_19 : f32
      %57 = arith.addf %54, %56 : f32
      %c0_20 = arith.constant 0 : index
      %58 = memref.load %arg3[%c0_20] : memref<1xf32, #tpu.memory_space<smem>>
      memref.store %57, %arg3[%c0_20] : memref<1xf32, #tpu.memory_space<smem>>
    } else {
    }
    return
  }
  func.func @transform_0(%arg0: i32) -> (i32, i32) {
    %c0_i32 = arith.constant 0 : i32
    %c0_i32_0 = arith.constant 0 : i32
    return %arg0, %c0_i32 : i32, i32
  }
  func.func @transform_1(%arg0: i32) -> (i32, i32) {
    %c0_i32 = arith.constant 0 : i32
    %c0_i32_0 = arith.constant 0 : i32
    return %arg0, %c0_i32 : i32, i32
  }
  func.func @transform_2(%arg0: i32) -> i32 {
    %c0_i32 = arith.constant 0 : i32
    %c0_i32_0 = arith.constant 0 : i32
    return %c0_i32 : i32
  }
}

</mosaic_0001>

<bundles_post_ra>
// kernel: tpu_custom_call.1
= control target key start
LH: loop header
LB: loop body
LE: loop exit
PB: predicated region body
PF: predicated region fallthrough
CT: control target
= control target key end

     0   :  { %7 = vsyncpa [#allocation4], 0  ;;  %s376_s9 = smov 0   ;;  %s426_s0 = inlined_call_operand.vmem [shape: f32[24,32], index: 0, kind: input, shape index: {}]   ;;  %s427_s1 = inlined_call_operand.vmem [shape: s32[24,1], index: 1, kind: input, shape index: {}]   ;;  %s428_s2 = inlined_call_operand.hbm [shape: f32[1], index: 2, kind: output, shape index: {}]  }
   0x1 LB: > { %s382_s10 = sadd.s32 4294967295, %s356_s9   ;;  %p289_p0 = scmp.ge.s32.totalorder %s356_s9, 1  ;;  %s356_s9 = sphi %s376_s9, %s13_s9  }
   0x2   : > { %p116_p1 = scmp.lt.s32.totalorder %s356_s9, 4 }
   0x4   : > { %p117_p2 = pnand %p289_p0, %p116_p1 }
   0x5   : > { %p136_p3 = scmp.lt.s32.totalorder (!%p117_p2), %s382_s10, 2  ;;  %v358_v0 = vmov (!%p117_p2), 0   ;;  %vm155_vm0 = vcmask (!%p117_p2), 261120   ;;  %v168_v8 = vlaneseq (!%p117_p2)  ;;  %s293_s19 = sshll.u32 (!%p117_p2), %s382_s10, 3  ;;  %vm200_vm3 = vcmask (!%p117_p2), 7168  }
   0x6   : > { %120 = sbr.rel (%p117_p2) target bundleno = 557 (0x22d), region = 28  ;;  %329 = vset.pattern.permute.xlu0 (!%p117_p2), %v358_v0  ;;  %v182_v16 = vstv (!%p117_p2), %s293_s19  ;;  %p314_p4 = scmp.eq.s32.totalorder (!%p117_p2), %s382_s10, 0 }
   0x7   : > { %v169_v9 = vand.u32 (!%p117_p2), 127, %v168_v8  ;;  %v181_v15 = vshrl.u32 (!%p117_p2), %v168_v8, 7  ;;  %s359_s20 = smov (!%p117_p2), 0.0   ;;  %p315_p5 = scmp.eq.s32.totalorder (!%p117_p2), %s382_s10, 2 }
   0x8   : > { %s334_s4 = scalar_lea.hbm (!%p117_p2), %s428_s2, 16 }
   0x9   : > { %v183_v17 = vadd.s32 (!%p117_p2), %v182_v16, %v181_v15  ;;  %p335_p6 = scmp.ne.s32.totalorder (!%p117_p2), %s428_s2, %s334_s4  ;;  %p340_p9 = scmp.lt.u32.totalorder (!%p117_p2), %s334_s4, %s428_s2 }
   0xb   : > { %vm184_vm2 = vcmp.lt.s32.totalorder (!%p117_p2), %v183_v17, 20  ;;  %p336_p7 = pnand (!%p117_p2), %p335_p6, %p315_p5 }
   0xd   : > { %s137_s11 = scalar_select %p136_p3, %s382_s10, 2 }
   0xe   : > { %307 = sst [smem:[#allocation2 + $0x1]] (%p314_p4), %s359_s20  ;;  %p337_p8 = pneg %p336_p7 }
   0xf   : > { %s290_s12 = sshll.u32 %s137_s11, 3  ;;  %306 = sst [smem:[#allocation2]] (%p314_p4), %s359_s20 }
  0x10   : > { %s139_s15 = scalar_lea.vmem %s426_s0, %s290_s12  ;;  %s143_s18 = scalar_lea.vmem %s427_s1, %s290_s12 }
  0x11   : > { %v152_v1 = vld [vmem:[%s139_s15] sm:$0xff]  ;;  %s294_s21 = sld [smem:[#allocation2 + $0x1]]  ;;  %s199_s24 = sld [smem:[#allocation2]] }
  0x12   : > { %v154_v2 = vsub.f32 0.0, %v152_v1  ;;  %v153_v4 = vld [vmem:[%s143_s18] sm:$0xff]  ;;  %v188_v18 = vsel %vm184_vm2, %v152_v1, 0.0  ;;  %p342_p10 = pnand %p340_p9, %p337_p8 }
  0x13   : > { %v189_v19 = vsel %vm155_vm0, %v188_v18, 0.0 }
  0x14   : > { %v156_v3 = vsel %vm155_vm0, %v154_v2, -inf }
  0x15   : > { %157 = vmax.xlane.f32.xlu0 %v156_v3 }
  0x2b   : > { %171 = vperm.xlu0 %329, %v153_v4  }
  0xa2   : > { %v158_v5 = vpop.xlane.xlu0 %157 }
  0xa3   : > { %v159_v6 = vsub.f32 %v154_v2, %v158_v5 }
  0xa5   : > { %v160_v7 = vmul.f32 1.442695, %v159_v6 }
  0xa7   : > { %330 = vpow2.f32 %v160_v7 }
  0xaa   : > { %v172_v10 = vpop.permute.xlu0 %171 }
  0xab   : > { %vm173_vm1 = vcmp.eq.s32.totalorder %v169_v9, %v172_v10 }
  0xac   : > { %v174_v12 = vsel %vm173_vm1, %v152_v1, 0.0 }
  0xad   : > { %v175_v14 = vsel %vm155_vm0, %v174_v12, 0.0 }
  0xb1   : > { %v331_v11 = vpop.eup %330 }
  0xb2   : > { %v162_v13 = vsel %vm155_vm0, %v331_v11, 0.0 }
  0xb3   : > { %163 = vadd.xlane.f32.xlu1 %v162_v13 }
  0xb7   : > { %176 = vadd.xlane.f32.xlu1 %v175_v14 }
  0xbb   : > { %190 = vadd.xlane.f32.xlu1 %v189_v19 }
 0x140   : > { %v164_v20 = vpop.xlane.xlu1 %163 }
 0x141   : > { %332 = vlog2.f32 %v164_v20 }
 0x144   : > { %v177_v23 = vpop.xlane.xlu1 %176 }
 0x148   : > { %v191_v28 = vpop.xlane.xlu1 %190 }
 0x149   : > { %v192_v29 = vrot.slane %v191_v28, 4 }
 0x14b   : > { %v333_v21 = vpop.eup %332  ;;  %v193_v30 = vadd.f32 %v192_v29, %v191_v28 }
 0x14c   : > { %v166_v22 = vmul.f32 0.6931472, %v333_v21 }
 0x14d   : > { %v194_v31 = vrot.slane %v193_v30, 2 }
 0x14e   : > { %v167_v24 = vadd.f32 %v166_v22, %v158_v5 }
 0x14f   : > { %v195_v32 = vadd.f32 %v194_v31, %v193_v30 }
 0x150   : > { %v178_v25 = vadd.f32 %v177_v23, %v167_v24 }
 0x151   : > { %v196_v33 = vrot.slane %v195_v32, 1 }
 0x152   : > { %v185_v26 = vsel %vm184_vm2, %v178_v25, 0.0 }
 0x153   : > { %v201_v27 = vsel %vm200_vm3, %v185_v26, 0.0  ;;  %v197_v34 = vadd.f32 %v196_v33, %v195_v32 }
 0x154   : > { %202 = vadd.xlane.f32.xlu1 %v201_v27 }
 0x155   : > { %301 = vpush %v197_v34 }
 0x186   : > { %s302_s22 = spop %301 }
 0x187   : > { %s215_s23 = sadd.f32 %s302_s22, %s294_s21 }
 0x189   : > { %217 = sst [smem:[#allocation2 + $0x1]] %s215_s23  ;;  %s225_s27 = smul.f32 0.0015625, %s215_s23 }
 0x1e1   : > { %v203_v35 = vpop.xlane.xlu1 %202 }
 0x1e2   : > { %v204_v36 = vrot.slane %v203_v35, 4 }
 0x1e4   : > { %v205_v37 = vadd.f32 %v204_v36, %v203_v35 }
 0x1e6   : > { %v206_v38 = vrot.slane %v205_v37, 2 }
 0x1e8   : > { %v207_v39 = vadd.f32 %v206_v38, %v205_v37 }
 0x1ea   : > { %v208_v40 = vrot.slane %v207_v39, 1 }
 0x1ec   : > { %v209_v41 = vadd.f32 %v208_v40, %v207_v39 }
 0x1ee   : > { %303 = vpush %v209_v41 }
 0x21f   : > { %s304_s25 = spop %303 }
 0x220   : > { %s211_s26 = sadd.f32 %s304_s25, %s199_s24 }
 0x222   : > { %213 = sst [smem:[#allocation2]] %s211_s26  ;;  %s223_s28 = smul.f32 0.05, %s211_s26 }
 0x224   : > { %s226_s29 = sadd.f32 %s225_s27, %s223_s28 }
 0x226   : > { %309 = sst [smem:[#allocation3]] (%p315_p5), %s226_s29 }
 0x227   : > { %345 = shalt.err (!%p342_p10)
}
 0x228   : > { %s360_s11 = smov [#allocation3]  }
 0x229   : > { %311 = dma.smem_to_hbm (%p315_p5), %s360_s11, 16, %s428_s2, [#allocation4]  }
 0x22a   : > { %351 = dma.done.wait (%p315_p5), [#allocation4], 16  }
 0x22b   : > { %353 = vsyncadd (%p315_p5), [#allocation4], 4294967280 }
 0x22c   : > { %242 = sfence }
 0x22d PF: > { %s13_s9 = sadd.s32 1, %s356_s9  }
 0x22e   : > { %p10_p11 = scmp.ge.s32.totalorder %s13_s9, 5  }
 0x230   :  { %12 = sbr.rel (!%p10_p11) target bundleno = 1 (0x1), region = 71 }
 0x237   :  { %248 = vsyncpa [#allocation4], 1 }
 0x238   :  { %250 = vsyncpa [#allocation4 + $0x1], 1 }

</bundles_post_ra>
